<compile_context>
chip_gen: v7x
topology: tpu7x:2x2x1
jax: 0.10.0
libtpu: 0.0.40
codegen_flags: <defaults>
</compile_context>

<pallas_src>
import jax
import jax.numpy as jnp
from jax import lax
from jax.experimental import pallas as pl
from jax.experimental.pallas import tpu as pltpu

_LANES = 128  # vreg lane width


def _round_up(x, m):
    return (x + m - 1) // m * m


def _mlp_kernel(u_ref, i_ref, wfu_ref, wfi_ref, wst_ref, bst_ref, out_ref):
    """Fused NCF-MLP forward for one batch tile.

    u_ref   : (b_tile, item_num)        f32/bf16  streamed user one-hot/feature rows
    i_ref   : (b_tile, user_num)        f32/bf16  streamed item one-hot/feature rows
    wfu_ref : (item_num, Dmax)          bf16  embed_user folded into trunk layer 0
    wfi_ref : (user_num, Dmax)          bf16  embed_item folded into trunk layer 0
    wst_ref : (L, Dmax, Dmax)           bf16  trunk layers 1.. + prediction head
    bst_ref : (L + 1, Dmax)             f32   biases (row 0 = fused layer-0 bias)
    out_ref : (1, b_tile // 128, 128)   f32   lane-dense sigmoid predictions
    """
    num_stack = wst_ref.shape[0]          # (num_hidden - 1) tail layers + head
    s_rows = out_ref.shape[1]             # b_tile // 128

    b_all = bst_ref[...]                  # (L + 1, Dmax) f32, resident

    # Fused first trunk layer (embeddings folded in):
    #   h = relu(u @ Wfu + i @ Wfi + b_f)   -- bf16 MXU operands, f32 accumulate.
    h = jnp.dot(u_ref[...].astype(jnp.bfloat16), wfu_ref[...],
                preferred_element_type=jnp.float32)
    h = h + jnp.dot(i_ref[...].astype(jnp.bfloat16), wfi_ref[...],
                    preferred_element_type=jnp.float32)
    h = jnp.maximum(h + b_all[0:1, :], 0.0)

    # Remaining trunk layers (Linear + ReLU); all lane-padded to Dmax so every
    # tile is lane-dense (zero padding commutes with bias add and ReLU).
    for l in range(num_stack - 1):
        h = jnp.maximum(
            jnp.dot(h.astype(jnp.bfloat16), wst_ref[l],
                    preferred_element_type=jnp.float32)
            + b_all[l + 1:l + 2, :],
            0.0)

    # Prediction head. The head weight column is broadcast across all Dmax
    # output columns in the wrapper, so every column of `logits` holds the
    # scalar logit of its row (MXU cost is identical either way).
    logits = jnp.dot(h.astype(jnp.bfloat16), wst_ref[num_stack - 1],
                     preferred_element_type=jnp.float32)
    logits = logits + b_all[num_stack:num_stack + 1, :]

    # Compact to a lane-dense (b_tile//128, 128) tile: batch row r maps to
    # (r // 128, r % 128) by taking the diagonal of each 128x128 sub-block.
    lg = logits[:, :_LANES].reshape(s_rows, _LANES, _LANES)
    rr = lax.broadcasted_iota(jnp.int32, (_LANES, _LANES), 0)
    cc = lax.broadcasted_iota(jnp.int32, (_LANES, _LANES), 1)
    eye = (rr == cc).astype(jnp.float32)
    compact = jnp.sum(lg * eye[None, :, :], axis=1)      # (s_rows, 128)

    # Sigmoid only on the valid (compacted) values: exp + approx reciprocal
    # both run on the EUP (approx=True -> ~1e-3 rel error, fine for inference).
    out_ref[...] = pl.reciprocal(1.0 + jnp.exp(-compact), approx=True)[None]


def mlp_forward(user_vecs, item_vecs, params, mlp_dims, *, batch_tile=2048):
    """Fused Pallas forward of the PyTorch MLP module.

    params:
      'wu','bu' : embed_user  (item_num, D0//2), (D0//2,)   [torch weight.T]
      'wi','bi' : embed_item  (user_num, D0//2), (D0//2,)
      'mlp'     : list of (W(in,out), b(out,)) per trunk layer
      'wp','bp' : prediction head (Dk, 1), (1,)
    Returns (B, 1) f32 predictions.
    """
    B, item_num = user_vecs.shape
    b2, user_num = item_vecs.shape
    assert B == b2, (B, b2)
    num_hidden = len(mlp_dims) - 1
    assert num_hidden >= 1, "need at least one trunk layer (len(mlp_dims) >= 2)"
    assert mlp_dims[0] % 2 == 0, "mlp_dims[0] must be even (user/item halves)"
    half = mlp_dims[0] // 2

    # Lane-dense width for every trunk/head dim.
    dmax = max(_LANES, max(_round_up(d, _LANES) for d in mlp_dims[1:]))

    # ---------------- parameter preparation (f32 fold, single bf16 cast) ----
    def pad2(w, rows, cols):
        out = jnp.zeros((rows, cols), jnp.float32)
        return out.at[:w.shape[0], :w.shape[1]].set(w.astype(jnp.float32))

    w0, b0 = params["mlp"][0]                       # (2*half, D1), (D1,)
    w0u, w0i = w0[:half, :], w0[half:, :]
    # Fold embeddings into trunk layer 0 (no nonlinearity in between):
    #   relu(cat(u@wu+bu, i@wi+bi) @ w0 + b0) == relu(u@Wfu + i@Wfi + b_f)
    wfu = params["wu"].astype(jnp.float32) @ w0u.astype(jnp.float32)
    wfi = params["wi"].astype(jnp.float32) @ w0i.astype(jnp.float32)
    b_f = (params["bu"].astype(jnp.float32) @ w0u.astype(jnp.float32)
           + params["bi"].astype(jnp.float32) @ w0i.astype(jnp.float32)
           + b0.astype(jnp.float32))

    wfu_p = pad2(wfu, item_num, dmax).astype(jnp.bfloat16)
    wfi_p = pad2(wfi, user_num, dmax).astype(jnp.bfloat16)

    w_list = []
    b_list = [pad2(b_f.reshape(1, -1), 1, dmax)[0]]
    for (w, b) in params["mlp"][1:]:
        w_list.append(pad2(w, dmax, dmax))
        b_list.append(pad2(b.reshape(1, -1), 1, dmax)[0])
    # Prediction head, broadcast across all Dmax output columns (so the kernel
    # can compact the per-row logit from any column).
    wp = params["wp"].astype(jnp.float32)           # (Dk, 1)
    bp = params["bp"].astype(jnp.float32)           # (1,)
    w_head = jnp.zeros((dmax, dmax), jnp.float32).at[:wp.shape[0], :].set(
        jnp.broadcast_to(wp, (wp.shape[0], dmax)))
    w_list.append(w_head)
    b_list.append(jnp.full((dmax,), bp[0], jnp.float32))

    w_stack = jnp.stack(w_list).astype(jnp.bfloat16)     # (L, Dmax, Dmax) bf16
    b_stack = jnp.stack(b_list)                          # (L + 1, Dmax) f32

    # TODO(synk): if item_num/user_num are large enough that wfu_p/wfi_p cannot
    # stay resident in VMEM (v7x: 64 MiB/TC), add an "arbitrary" K-reduction
    # grid axis over the embedding input dim with an f32 VMEM accumulator.

    # ---------------- batch tiling -------------------------------------------
    b128 = _round_up(B, _LANES)
    b_tile = _round_up(min(batch_tile, b128), _LANES)
    # v7x megacore: ensure >= 2 grid steps whenever the batch spans >= 2
    # minimal tiles, so the "parallel" batch axis shards across both TCs.
    if b128 >= 2 * _LANES:
        b_tile = min(b_tile, _round_up(b128 // 2, _LANES))
    # Conservative VMEM cap: double-buffered f32 activation tiles plus f32
    # intermediates must fit v5e's 16 MiB scoped default (also safe on v7x).
    per_row_bytes = 2 * 2 * 4 * (item_num + user_num) + 4 * 4 * dmax
    max_rows = max(_LANES, (12 << 20) // per_row_bytes)
    b_tile = min(b_tile, max(_LANES, (max_rows // _LANES) * _LANES))

    padded_b = _round_up(B, b_tile)
    n_tiles = padded_b // b_tile
    s_rows = b_tile // _LANES

    # Single zero-pad of the batch dim only when needed (no dtype round-trip;
    # the bf16 cast happens in-kernel so HBM reads stay one pass).
    pad_rows = padded_b - B
    if pad_rows:
        u = jnp.pad(user_vecs, ((0, pad_rows), (0, 0)))
        iv = jnp.pad(item_vecs, ((0, pad_rows), (0, 0)))
    else:
        u, iv = user_vecs, item_vecs

    # ---------------- specs ---------------------------------------------------
    def resident_spec(shape):
        # Constant block index -> fetched once; single-buffer to halve the
        # parameter VMEM footprint.
        return pl.BlockSpec(shape, lambda t: (0,) * len(shape),
                            pipeline_mode=pl.Buffered(1))

    in_specs = [
        pl.BlockSpec((b_tile, item_num), lambda t: (t, 0)),
        pl.BlockSpec((b_tile, user_num), lambda t: (t, 0)),
        resident_spec(wfu_p.shape),
        resident_spec(wfi_p.shape),
        resident_spec(w_stack.shape),
        resident_spec(b_stack.shape),
    ]
    out_spec = pl.BlockSpec((1, s_rows, _LANES), lambda t: (t, 0, 0))

    # Advisory cost estimate (sigmoid only on valid rows now).
    flops = 2 * padded_b * (item_num + user_num) * dmax
    flops += 2 * padded_b * dmax * dmax * num_hidden        # tail layers + head
    bytes_accessed = int(u.size + iv.size) * u.dtype.itemsize
    bytes_accessed += int(wfu_p.size + wfi_p.size + w_stack.size) * 2
    bytes_accessed += int(b_stack.size) * 4
    bytes_accessed += padded_b * 4                          # compact f32 output
    cost = pl.CostEstimate(flops=int(flops), transcendentals=int(padded_b),
                           bytes_accessed=int(bytes_accessed))

    out = pl.pallas_call(
        _mlp_kernel,
        out_shape=jax.ShapeDtypeStruct((n_tiles, s_rows, _LANES), jnp.float32),
        grid=(n_tiles,),
        in_specs=in_specs,
        out_specs=out_spec,
        compiler_params=pltpu.CompilerParams(
            dimension_semantics=("parallel",)),
        cost_estimate=cost,
    )(u, iv, wfu_p, wfi_p, w_stack, b_stack)

    # out[t, s, c] == prediction for batch row t*b_tile + s*128 + c.
    return out.reshape(-1)[:B].reshape(B, 1)


def init_params(key, user_num, item_num, mlp_dims):
    """Deterministic synthetic parameters (PyTorch Linear shapes, transposed)."""
    half = mlp_dims[0] // 2
    keys = jax.random.split(key, 4 + 2 * len(mlp_dims))
    k = iter(keys)

    def lin(kk, fan_in, fan_out):
        w = jax.random.normal(kk, (fan_in, fan_out), jnp.float32) * 0.1
        b = jnp.linspace(-0.05, 0.05, fan_out, dtype=jnp.float32)
        return w, b

    wu, bu = lin(next(k), item_num, half)   # embed_user: Linear(item_num, D0//2)
    wi, bi = lin(next(k), user_num, half)   # embed_item: Linear(user_num, D0//2)
    mlp = []
    for idx in range(len(mlp_dims) - 1):
        w, b = lin(next(k), mlp_dims[idx], mlp_dims[idx + 1])
        mlp.append((w, b))
    wp, bp = lin(next(k), mlp_dims[-1], 1)
    return {"wu": wu, "bu": bu, "wi": wi, "bi": bi,
            "mlp": mlp, "wp": wp, "bp": bp}


def reference_forward(user_vecs, item_vecs, params):
    """Pure-JAX f32 reference mirroring the PyTorch module."""
    u = user_vecs @ params["wu"] + params["bu"]
    i = item_vecs @ params["wi"] + params["bi"]
    h = jnp.concatenate([u, i], axis=1)
    for (w, b) in params["mlp"]:
        h = jnp.maximum(h @ w + b, 0.0)
    return jax.nn.sigmoid(h @ params["wp"] + params["bp"])


if __name__ == "__main__":
    # Small synthetic problem consistent with the module's forward:
    #   user_vecs: (B, item_num), item_vecs: (B, user_num)
    B = 4
    user_num = 12
    item_num = 10
    mlp_dims = [32, 16, 8]

    root = jax.random.PRNGKey(0)
    k_u, k_i, k_p = jax.random.split(root, 3)
    user_vecs = jax.random.normal(k_u, (B, item_num), jnp.float32)
    item_vecs = jax.random.normal(k_i, (B, user_num), jnp.float32)
    params = init_params(k_p, user_num, item_num, mlp_dims)

    out = mlp_forward(user_vecs, item_vecs, params, mlp_dims)
    out = jax.block_until_ready(out)

    ref = reference_forward(user_vecs, item_vecs, params)
    assert out.shape == (B, 1), out.shape
    # bf16 MXU operands + folded (bf16-once) weights + approx reciprocal
    # -> relaxed tolerance vs the f32 reference.
    assert jnp.allclose(out, ref, atol=2e-2, rtol=0.0), (out, ref)
    print("KERNEL_OK")
</pallas_src>

<mosaic_0001>
module attributes {stable_mosaic.version = 11 : i64} {
  func.func @_mlp_kernel(%arg0: i32, %arg1: memref<128x10xf32, #tpu.memory_space<vmem>>, %arg2: memref<128x12xf32, #tpu.memory_space<vmem>>, %arg3: memref<10x128xbf16, #tpu.memory_space<vmem>>, %arg4: memref<12x128xbf16, #tpu.memory_space<vmem>>, %arg5: memref<2x128x128xbf16, #tpu.memory_space<vmem>>, %arg6: memref<3x128xf32, #tpu.memory_space<vmem>>, %arg7: memref<1x1x128xf32, #tpu.memory_space<vmem>>) attributes {dimension_semantics = [#tpu.dimension_semantics<parallel>], iteration_bounds = array<i64: 1>, scalar_prefetch = 0 : i64, scratch_operands = 0 : i64, tpu.core_type = #tpu.core_type<tc>, window_params = [{transform_indices = @transform_0, window_bounds = array<i64: 128, 10>}, {transform_indices = @transform_1, window_bounds = array<i64: 128, 12>}, {pipeline_mode = #tpu.pipeline_mode<synchronous>, transform_indices = @transform_2, window_bounds = array<i64: 10, 128>}, {pipeline_mode = #tpu.pipeline_mode<synchronous>, transform_indices = @transform_3, window_bounds = array<i64: 12, 128>}, {pipeline_mode = #tpu.pipeline_mode<synchronous>, transform_indices = @transform_4, window_bounds = array<i64: 2, 128, 128>}, {pipeline_mode = #tpu.pipeline_mode<synchronous>, transform_indices = @transform_5, window_bounds = array<i64: 3, 128>}, {transform_indices = @transform_6, window_bounds = array<i64: 1, 1, 128>}]} {
    %c0 = arith.constant 0 : index
    %c0_0 = arith.constant 0 : index
    %0 = vector.load %arg6[%c0, %c0_0] : memref<3x128xf32, #tpu.memory_space<vmem>>, vector<3x128xf32>
    %c0_1 = arith.constant 0 : index
    %c0_2 = arith.constant 0 : index
    %1 = vector.load %arg1[%c0_1, %c0_2] : memref<128x10xf32, #tpu.memory_space<vmem>>, vector<128x10xf32>
    %2 = arith.truncf %1 : vector<128x10xf32> to vector<128x10xbf16>
    %c0_3 = arith.constant 0 : index
    %c0_4 = arith.constant 0 : index
    %3 = vector.load %arg3[%c0_3, %c0_4] : memref<10x128xbf16, #tpu.memory_space<vmem>>, vector<10x128xbf16>
    %cst = arith.constant dense<0.000000e+00> : vector<128x128xf32>
    %4 = tpu.matmul %2, %3, %cst {dimension_numbers = #tpu.dot_dimension_numbers<[1], [0], [0], [1], [0, 0, 1, 1], [], []>} : vector<128x10xbf16>, vector<10x128xbf16>, vector<128x128xf32> -> vector<128x128xf32>
    %c0_5 = arith.constant 0 : index
    %c0_6 = arith.constant 0 : index
    %5 = vector.load %arg2[%c0_5, %c0_6] : memref<128x12xf32, #tpu.memory_space<vmem>>, vector<128x12xf32>
    %6 = arith.truncf %5 : vector<128x12xf32> to vector<128x12xbf16>
    %c0_7 = arith.constant 0 : index
    %c0_8 = arith.constant 0 : index
    %7 = vector.load %arg4[%c0_7, %c0_8] : memref<12x128xbf16, #tpu.memory_space<vmem>>, vector<12x128xbf16>
    %cst_9 = arith.constant dense<0.000000e+00> : vector<128x128xf32>
    %8 = tpu.matmul %6, %7, %cst_9 {dimension_numbers = #tpu.dot_dimension_numbers<[1], [0], [0], [1], [0, 0, 1, 1], [], []>} : vector<128x12xbf16>, vector<12x128xbf16>, vector<128x128xf32> -> vector<128x128xf32>
    %9 = arith.addf %4, %8 : vector<128x128xf32>
    %10 = vector.extract_strided_slice %0 {offsets = [0, 0], sizes = [1, 128], strides = [1, 1]} : vector<3x128xf32> to vector<1x128xf32>
    %11 = vector.broadcast %10 : vector<1x128xf32> to vector<128x128xf32>
    %12 = arith.addf %9, %11 : vector<128x128xf32>
    %cst_10 = arith.constant 0.000000e+00 : f32
    %13 = vector.broadcast %cst_10 : f32 to vector<128x128xf32>
    %14 = arith.maximumf %12, %13 : vector<128x128xf32>
    %15 = arith.truncf %14 : vector<128x128xf32> to vector<128x128xbf16>
    %c0_11 = arith.constant 0 : index
    %c0_12 = arith.constant 0 : index
    %c0_13 = arith.constant 0 : index
    %16 = vector.load %arg5[%c0_11, %c0_12, %c0_13] : memref<2x128x128xbf16, #tpu.memory_space<vmem>>, vector<1x128x128xbf16>
    %17 = vector.shape_cast %16 : vector<1x128x128xbf16> to vector<128x128xbf16>
    %cst_14 = arith.constant dense<0.000000e+00> : vector<128x128xf32>
    %18 = tpu.matmul %15, %17, %cst_14 {dimension_numbers = #tpu.dot_dimension_numbers<[1], [0], [0], [1], [0, 0, 1, 1], [], []>} : vector<128x128xbf16>, vector<128x128xbf16>, vector<128x128xf32> -> vector<128x128xf32>
    %19 = vector.extract_strided_slice %0 {offsets = [1, 0], sizes = [1, 128], strides = [1, 1]} : vector<3x128xf32> to vector<1x128xf32>
    %20 = vector.broadcast %19 : vector<1x128xf32> to vector<128x128xf32>
    %21 = arith.addf %18, %20 : vector<128x128xf32>
    %cst_15 = arith.constant 0.000000e+00 : f32
    %22 = vector.broadcast %cst_15 : f32 to vector<128x128xf32>
    %23 = arith.maximumf %21, %22 : vector<128x128xf32>
    %24 = arith.truncf %23 : vector<128x128xf32> to vector<128x128xbf16>
    %c1 = arith.constant 1 : index
    %c0_16 = arith.constant 0 : index
    %c0_17 = arith.constant 0 : index
    %25 = vector.load %arg5[%c1, %c0_16, %c0_17] : memref<2x128x128xbf16, #tpu.memory_space<vmem>>, vector<1x128x128xbf16>
    %26 = vector.shape_cast %25 : vector<1x128x128xbf16> to vector<128x128xbf16>
    %cst_18 = arith.constant dense<0.000000e+00> : vector<128x128xf32>
    %27 = tpu.matmul %24, %26, %cst_18 {dimension_numbers = #tpu.dot_dimension_numbers<[1], [0], [0], [1], [0, 0, 1, 1], [], []>} : vector<128x128xbf16>, vector<128x128xbf16>, vector<128x128xf32> -> vector<128x128xf32>
    %28 = vector.extract_strided_slice %0 {offsets = [2, 0], sizes = [1, 128], strides = [1, 1]} : vector<3x128xf32> to vector<1x128xf32>
    %29 = vector.broadcast %28 : vector<1x128xf32> to vector<128x128xf32>
    %30 = arith.addf %27, %29 : vector<128x128xf32>
    %31 = vector.shape_cast %30 : vector<128x128xf32> to vector<1x128x128xf32>
    %32 = tpu.iota {dimensions = array<i32: 0>} : vector<128x128xi32>
    %33 = tpu.iota {dimensions = array<i32: 1>} : vector<128x128xi32>
    %34 = arith.cmpi eq, %32, %33 : vector<128x128xi32>
    %35 = arith.extui %34 : vector<128x128xi1> to vector<128x128xi32>
    %36 = arith.sitofp %35 : vector<128x128xi32> to vector<128x128xf32>
    %37 = vector.shape_cast %36 : vector<128x128xf32> to vector<1x128x128xf32>
    %38 = arith.mulf %31, %37 : vector<1x128x128xf32>
    %cst_19 = arith.constant dense<0.000000e+00> : vector<1x128xf32>
    %39 = vector.multi_reduction <add>, %38, %cst_19 [1] : vector<1x128x128xf32> to vector<1x128xf32>
    %cst_20 = arith.constant 0.000000e+00 : f32
    %40 = vector.broadcast %cst_20 : f32 to vector<1x128xf32>
    %41 = arith.subf %40, %39 : vector<1x128xf32>
    %42 = math.exp %41 : vector<1x128xf32>
    %cst_21 = arith.constant 1.000000e+00 : f32
    %43 = vector.broadcast %cst_21 : f32 to vector<1x128xf32>
    %44 = arith.addf %43, %42 : vector<1x128xf32>
    %45 = tpu.reciprocal %44 {approx = true} : vector<1x128xf32> -> vector<1x128xf32>
    %46 = vector.shape_cast %45 : vector<1x128xf32> to vector<1x1x128xf32>
    %c0_22 = arith.constant 0 : index
    %c0_23 = arith.constant 0 : index
    %c0_24 = arith.constant 0 : index
    %47 = vector.load %arg7[%c0_22, %c0_23, %c0_24] : memref<1x1x128xf32, #tpu.memory_space<vmem>>, vector<1x1x128xf32>
    tpu.vector_store %arg7[%c0_22, %c0_23, %c0_24], %46 {strides = array<i32>} : memref<1x1x128xf32, #tpu.memory_space<vmem>>, vector<1x1x128xf32>,
    return
  }
  func.func @transform_0(%arg0: i32) -> (i32, i32) {
    %c0_i32 = arith.constant 0 : i32
    %c0_i32_0 = arith.constant 0 : i32
    return %arg0, %c0_i32 : i32, i32
  }
  func.func @transform_1(%arg0: i32) -> (i32, i32) {
    %c0_i32 = arith.constant 0 : i32
    %c0_i32_0 = arith.constant 0 : i32
    return %arg0, %c0_i32 : i32, i32
  }
  func.func @transform_2(%arg0: i32) -> (i32, i32) {
    %c0_i32 = arith.constant 0 : i32
    %c0_i32_0 = arith.constant 0 : i32
    %c0_i32_1 = arith.constant 0 : i32
    return %c0_i32, %c0_i32_0 : i32, i32
  }
  func.func @transform_3(%arg0: i32) -> (i32, i32) {
    %c0_i32 = arith.constant 0 : i32
    %c0_i32_0 = arith.constant 0 : i32
    %c0_i32_1 = arith.constant 0 : i32
    return %c0_i32, %c0_i32_0 : i32, i32
  }
  func.func @transform_4(%arg0: i32) -> (i32, i32, i32) {
    %c0_i32 = arith.constant 0 : i32
    %c0_i32_0 = arith.constant 0 : i32
    %c0_i32_1 = arith.constant 0 : i32
    %c0_i32_2 = arith.constant 0 : i32
    return %c0_i32, %c0_i32_0, %c0_i32_1 : i32, i32, i32
  }
  func.func @transform_5(%arg0: i32) -> (i32, i32) {
    %c0_i32 = arith.constant 0 : i32
    %c0_i32_0 = arith.constant 0 : i32
    %c0_i32_1 = arith.constant 0 : i32
    return %c0_i32, %c0_i32_0 : i32, i32
  }
  func.func @transform_6(%arg0: i32) -> (i32, i32, i32) {
    %c0_i32 = arith.constant 0 : i32
    %c0_i32_0 = arith.constant 0 : i32
    %c0_i32_1 = arith.constant 0 : i32
    return %arg0, %c0_i32, %c0_i32_0 : i32, i32, i32
  }
}

</mosaic_0001>

<bundles_post_ra>
// kernel: tpu_custom_call.1
= control target key start
LH: loop header
LB: loop body
LE: loop exit
PB: predicated region body
PF: predicated region fallthrough
CT: control target
= control target key end

     0   :  { %vm108_vm0 = vcmask 1045504   ;;  %vm83_vm1 = vcmask 97280   ;;  %vm239_vm2 = vcmask 1044480   ;;  %s1499_s0 = inlined_call_operand.vmem [shape: f32[128,10], index: 0, kind: input, shape index: {}]   ;;  %s1500_s1 = inlined_call_operand.vmem [shape: f32[128,12], index: 1, kind: input, shape index: {}]   ;;  %s1501_s2 = inlined_call_operand.vmem [shape: bf16[10,128], index: 2, kind: input, shape index: {}]   ;;  %s1502_s3 = inlined_call_operand.vmem [shape: bf16[12,128], index: 3, kind: input, shape index: {}]   ;;  %s1503_s4 = inlined_call_operand.vmem [shape: bf16[2,128,128], index: 4, kind: input, shape index: {}]   ;;  %s1504_s5 = inlined_call_operand.vmem [shape: f32[3,128], index: 5, kind: input, shape index: {}]   ;;  %s1505_s6 = inlined_call_operand.hbm [shape: f32[1,1,128], index: 6, kind: output, shape index: {}]  }
   0x1   :  { %v1115_v0 = vld [vmem:[%s1502_s3] sm:$0x3f]   ;;  %v53_v2 = vld [vmem:[%s1500_s1 + $0x8] sm:$0xff]  ;;  %v54_v3 = vld [vmem:[%s1500_s1 + $0x10] sm:$0xff] }
   0x2   :  { %v52_v1 = vld [vmem:[%s1500_s1] sm:$0xff]  ;;  %1111 = vmatprep.subr.msk.bf16.mxu0 %vm108_vm0, %v1115_v0  ;;  %v110_v4 = vsel %vm108_vm0, %v1115_v0, 0  ;;  %v55_v6 = vld [vmem:[%s1500_s1 + $0x18] sm:$0xff]  ;;  %v57_v10 = vld [vmem:[%s1500_s1 + $0x28] sm:$0xff] }
   0x3   :  { %v68_v5 = vpack.c.bf16 %v53_v2, %v52_v1  ;;  %980 = vmatpush3.bf16.msra.mxu0 %v110_v4  ;;  %v69_v7 = vpack.c.bf16 %v55_v6, %v54_v3  ;;  %v1116_v8 = vld [vmem:[%s1501_s2] sm:$0x1f]   ;;  %v58_v13 = vld [vmem:[%s1500_s1 + $0x30] sm:$0xff]  ;;  %v59_v14 = vld [vmem:[%s1500_s1 + $0x38] sm:$0xff] }
   0x4   :  { %v56_v9 = vld [vmem:[%s1500_s1 + $0x20] sm:$0xff]  ;;  %1112 = vmatprep.subr.msk.bf16.mxu0 %vm239_vm2, %v1116_v8  ;;  %v241_v12 = vsel %vm239_vm2, %v1116_v8, 0  ;;  %v61_v16 = vld [vmem:[%s1500_s1 + $0x48] sm:$0xff]  ;;  %v71_v17 = vpack.c.bf16 %v59_v14, %v58_v13  ;;  %v62_v19 = vld [vmem:[%s1500_s1 + $0x50] sm:$0xff] }
   0x5   :  { %981 = vmatprep.mubr.msk.bf16.mxu0 %vm83_vm1, %v68_v5  ;;  %v70_v11 = vpack.c.bf16 %v57_v10, %v56_v9  ;;  %v60_v15 = vld [vmem:[%s1500_s1 + $0x40] sm:$0xff]  ;;  %v63_v20 = vld [vmem:[%s1500_s1 + $0x58] sm:$0xff]  ;;  %v1118_v22 = vld [vmem:[%s1503_s4 + $0x8] sm:$0xff]  }
   0x6   :  { %982 = vmatmul.mubr.msk.bf16.vlgmr.msra.gmra.mrb[0].mxu0 %vm83_vm1, %v69_v7  ;;  %v72_v18 = vpack.c.bf16 %v61_v16, %v60_v15  ;;  %v1117_v21 = vld [vmem:[%s1503_s4] sm:$0xff]   ;;  %v65_v24 = vld [vmem:[%s1500_s1 + $0x68] sm:$0xff]  ;;  %v1119_v25 = vld [vmem:[%s1503_s4 + $0x10] sm:$0xff]   ;;  %v73_v26 = vpack.c.bf16 %v63_v20, %v62_v19 }
   0x7   :  { %998 = vmatpush3.bf16.msra.mxu0 %v241_v12  ;;  %985 = vmatprep.mubr.msk.bf16.mxu0 %vm83_vm1, %v70_v11  ;;  %v64_v23 = vld [vmem:[%s1500_s1 + $0x60] sm:$0xff]  ;;  %v1120_v28 = vld [vmem:[%s1503_s4 + $0x18] sm:$0xff]   ;;  %v66_v29 = vld [vmem:[%s1500_s1 + $0x70] sm:$0xff] }
   0x8   :  { %1015 = vmatprep.subr.bf16.mxu1 %v1117_v21  ;;  %v74_v27 = vpack.c.bf16 %v65_v24, %v64_v23  ;;  %v67_v30 = vld [vmem:[%s1500_s1 + $0x78] sm:$0xff]  ;;  %v26_v31 = vld [vmem:[%s1499_s0] sm:$0xff]  ;;  %v27_v32 = vld [vmem:[%s1499_s0 + $0x8] sm:$0xff] }
   0x9   :  { %1016 = vmatpush3.bf16.msra.mxu1 %v1117_v21  ;;  %v1121_v33 = vld [vmem:[%s1503_s4 + $0x20] sm:$0xff]  }
   0xa   :  { %1017 = vmatprep.subr.bf16.mxu1 %v1118_v22 }
   0xd   :  { %1018 = vmatpush3.bf16.msra.mxu1 %v1118_v22 }
   0xe   :  { %986 = vmatmul.mubr.msk.bf16.gmra.mrb[4].mxu0 %vm83_vm1, %v71_v17  ;;  %1019 = vmatprep.subr.bf16.mxu1 %v1119_v25 }
   0xf   :  { %989 = vmatprep.mubr.msk.bf16.mxu0 %vm83_vm1, %v72_v18 }
  0x11   :  { %1020 = vmatpush3.bf16.msra.mxu1 %v1119_v25 }
  0x12   :  { %1021 = vmatprep.subr.bf16.mxu1 %v1120_v28 }
  0x16   :  { %990 = vmatmul.mubr.msk.bf16.gmra.mrb[8].mxu0 %vm83_vm1, %v73_v26 }
  0x17   :  { %993 = vmatprep.mubr.msk.bf16.mxu0 %vm83_vm1, %v74_v27 }
  0x18   :  { %11 = vsyncpa [#allocation3], 0  ;;  %v75_v34 = vpack.c.bf16 %v67_v30, %v66_v29  ;;  %v42_v35 = vpack.c.bf16 %v27_v32, %v26_v31  ;;  %vm214_vm3 = vcmask 80896   ;;  %1022 = vmatpush3.bf16.msra.mxu1 %v1120_v28  ;;  %v1122_v36 = vld [vmem:[%s1503_s4 + $0x28] sm:$0xff]   ;;  %v28_v37 = vld [vmem:[%s1499_s0 + $0x10] sm:$0xff]  ;;  %v340_v2 = vlaneseq }
  0x19   :  { %1023 = vmatprep.subr.bf16.mxu1 %v1121_v33  ;;  %v29_v38 = vld [vmem:[%s1499_s0 + $0x18] sm:$0xff]  ;;  %v30_v39 = vld [vmem:[%s1499_s0 + $0x20] sm:$0xff]  ;;  %v31_v40 = vld [vmem:[%s1499_s0 + $0x28] sm:$0xff] }
  0x1a   :  { %v43_v41 = vpack.c.bf16 %v29_v38, %v28_v37  ;;  %v44_v42 = vpack.c.bf16 %v31_v40, %v30_v39  ;;  %v32_v43 = vld [vmem:[%s1499_s0 + $0x30] sm:$0xff]  ;;  %v33_v44 = vld [vmem:[%s1499_s0 + $0x38] sm:$0xff]  ;;  %v34_v45 = vld [vmem:[%s1499_s0 + $0x40] sm:$0xff]  ;;  %v1371_v3 = vshrl.u32 %v340_v2, 7 }
  0x1b   :  { %v35_v46 = vld [vmem:[%s1499_s0 + $0x48] sm:$0xff]  ;;  %v45_v47 = vpack.c.bf16 %v33_v44, %v32_v43  ;;  %v36_v49 = vld [vmem:[%s1499_s0 + $0x50] sm:$0xff]  ;;  %v37_v50 = vld [vmem:[%s1499_s0 + $0x58] sm:$0xff] }
  0x1c   :  { %1024 = vmatpush3.bf16.msra.mxu1 %v1121_v33  ;;  %v46_v48 = vpack.c.bf16 %v35_v46, %v34_v45  ;;  %v38_v51 = vld [vmem:[%s1499_s0 + $0x60] sm:$0xff]  ;;  %v39_v52 = vld [vmem:[%s1499_s0 + $0x68] sm:$0xff]  ;;  %v47_v53 = vpack.c.bf16 %v37_v50, %v36_v49  ;;  %v40_v55 = vld [vmem:[%s1499_s0 + $0x70] sm:$0xff]  ;;  %v342_v4 = vsub.s32 0, %v1371_v3 }
  0x1d   :  { %1025 = vmatprep.subr.bf16.mxu1 %v1122_v36  ;;  %v48_v54 = vpack.c.bf16 %v39_v52, %v38_v51  ;;  %v41_v56 = vld [vmem:[%s1499_s0 + $0x78] sm:$0xff]  ;;  %v1123_v58 = vld [vmem:[%s1503_s4 + $0x30] sm:$0xff]   ;;  %v1125_v60 = vld [vmem:[%s1503_s4 + $0x40] sm:$0xff]  }
  0x1e   :  { %994 = vmatmul.mubr.msk.bf16.gmra.mrb[12].mxu0 %vm83_vm1, %v75_v34  ;;  %v49_v57 = vpack.c.bf16 %v41_v56, %v40_v55  ;;  %v1124_v59 = vld [vmem:[%s1503_s4 + $0x38] sm:$0xff]   ;;  %v1126_v61 = vld [vmem:[%s1503_s4 + $0x48] sm:$0xff]   ;;  %1047 = vmatprep.subr.bf16.mxu0 %v1125_v60  ;;  %v1127_v62 = vld [vmem:[%s1503_s4 + $0x50] sm:$0xff]  }
  0x1f   :  { %999 = vmatprep.mubr.msk.bf16.mxu0 %vm214_vm3, %v42_v35  ;;  %v1352_v63 = vld [vmem:[%s1503_s4 + $0x58] sm:$0xff]   ;;  %v1358_v0 = vld [vmem:[%s1503_s4 + $0x60] sm:$0xff]   ;;  %v1365_v1 = vld [vmem:[%s1503_s4 + $0x68] sm:$0xff]  }
  0x20   :  { %1026 = vmatpush3.bf16.msra.mxu1 %v1122_v36  ;;  %v1377_v5 = vld [vmem:[%s1504_s5] sm:$0x7] }
  0x21   :  { %1027 = vmatprep.subr.bf16.mxu1 %v1123_v58  ;;  %v1380_v6 = vrot.slane %v1377_v5, %v342_v4 }
  0x24   :  { %1028 = vmatpush3.bf16.msra.mxu1 %v1123_v58 }
  0x25   :  { %1029 = vmatprep.subr.bf16.mxu1 %v1124_v59 }
  0x26   :  { %1000 = vmatmul.mubr.msk.bf16.vlgmr.msra.gmra.mrb[0].mxu0 %vm214_vm3, %v43_v41 }
  0x27   :  { %1003 = vmatprep.mubr.msk.bf16.mxu0 %vm214_vm3, %v44_v42  ;;  %1048 = vmatpush3.bf16.msra.mxu0 %v1125_v60 }
  0x28   :  { %1030 = vmatpush3.bf16.msra.mxu1 %v1124_v59  ;;  %1049 = vmatprep.subr.bf16.mxu0 %v1126_v61 }
  0x29   :  { %1079 = vmatprep.subr.bf16.mxu1 %v1125_v60 }
  0x2b   :  { %1050 = vmatpush3.bf16.msra.mxu0 %v1126_v61 }
  0x2c   :  { %1051 = vmatprep.subr.bf16.mxu0 %v1127_v62 }
  0x2e   :  { %1004 = vmatmul.mubr.msk.bf16.gmra.mrb[4].mxu0 %vm214_vm3, %v45_v47 }
  0x2f   :  { %1007 = vmatprep.mubr.msk.bf16.mxu0 %vm214_vm3, %v46_v48  ;;  %1052 = vmatpush3.bf16.msra.mxu0 %v1127_v62 }
  0x30   :  { %1053 = vmatprep.subr.bf16.mxu0 %v1352_v63 }
  0x33   :  { %1054 = vmatpush3.bf16.msra.mxu0 %v1352_v63 }
  0x34   :  { %1055 = vmatprep.subr.bf16.mxu0 %v1358_v0 }
  0x36   :  { %1008 = vmatmul.mubr.msk.bf16.gmra.mrb[8].mxu0 %vm214_vm3, %v47_v53 }
  0x37   :  { %1011 = vmatprep.mubr.msk.bf16.mxu0 %vm214_vm3, %v48_v54  ;;  %1056 = vmatpush3.bf16.msra.mxu0 %v1358_v0 }
  0x38   :  { %1057 = vmatprep.subr.bf16.mxu0 %v1365_v1 }
  0x3b   :  { %1058 = vmatpush3.bf16.msra.mxu0 %v1365_v1 }
  0x3e   :  { %1012 = vmatmul.mubr.msk.bf16.gmra.mrb[12].mxu0 %vm214_vm3, %v49_v57 }
  0xf9   :  { %v1001_v7 = vpop.f32.mrb[0].mxu0 }
  0xfa   :  { %v346_v8 = vadd.f32 %v1001_v7, %v1380_v6  ;;  %v277_v9 = vpop.f32.mrb[1].mxu0 }
  0xfb   :  { %v344_v10 = vadd.f32 %v1380_v6, %v277_v9  ;;  %v1002_v11 = vpop.f32.mrb[2].mxu0 }
  0xfc   :  { %v347_v12 = vadd.f32 %v1002_v11, %v1380_v6  ;;  %v280_v13 = vpop.f32.mrb[3].mxu0  ;;  %v362_v15 = vmax.f32 %v346_v8, 0.0 }
  0xfd   :  { %v345_v14 = vadd.f32 %v1380_v6, %v280_v13  ;;  %v360_v17 = vmax.f32 %v344_v10, 0.0 }
  0xfe   :  { %v363_v16 = vmax.f32 %v347_v12, 0.0 }
  0xff   :  { %v361_v18 = vmax.f32 %v345_v14, 0.0 }
 0x100   :  { %v377_v19 = vpack.c.bf16 %v363_v16, %v362_v15 }
 0x101   :  { %v1005_v20 = vpop.f32.mrb[4].mxu0  ;;  %v376_v21 = vpack.c.bf16 %v361_v18, %v360_v17 }
 0x102   :  { %v350_v22 = vadd.f32 %v1005_v20, %v1380_v6  ;;  %v293_v23 = vpop.f32.mrb[5].mxu0 }
 0x103   :  { %v348_v24 = vadd.f32 %v1380_v6, %v293_v23  ;;  %v1006_v25 = vpop.f32.mrb[6].mxu0  ;;  %1031 = vmatprep.mubr.bf16.mxu1 %v376_v21 }
 0x104   :  { %v351_v26 = vadd.f32 %v1006_v25, %v1380_v6  ;;  %v296_v27 = vpop.f32.mrb[7].mxu0  ;;  %1032 = vmatmul.mubr.bf16.vlgmr.msra.gmra.mrb[0].mxu1 %v377_v19  ;;  %v366_v29 = vmax.f32 %v350_v22, 0.0 }
 0x105   :  { %v349_v28 = vadd.f32 %v1380_v6, %v296_v27  ;;  %1087 = vmatpush3.bf16.msra.mxu1 %v1125_v60  ;;  %v364_v31 = vmax.f32 %v348_v24, 0.0 }
 0x106   :  { %v367_v30 = vmax.f32 %v351_v26, 0.0  ;;  %1080 = vmatprep.subr.bf16.mxu1 %v1126_v61 }
 0x107   :  { %v365_v32 = vmax.f32 %v349_v28, 0.0 }
 0x108   :  { %v379_v33 = vpack.c.bf16 %v367_v30, %v366_v29 }
 0x109   :  { %v378_v34 = vpack.c.bf16 %v365_v32, %v364_v31  ;;  %v1009_v35 = vpop.f32.mrb[8].mxu0  ;;  %1088 = vmatpush3.bf16.msra.mxu1 %v1126_v61 }
 0x10a   :  { %v354_v36 = vadd.f32 %v1009_v35, %v1380_v6  ;;  %v309_v37 = vpop.f32.mrb[9].mxu0  ;;  %1081 = vmatprep.subr.bf16.mxu1 %v1127_v62 }
 0x10b   :  { %v352_v38 = vadd.f32 %v1380_v6, %v309_v37  ;;  %v1010_v39 = vpop.f32.mrb[10].mxu0  ;;  %1035 = vmatprep.mubr.bf16.mxu1 %v378_v34 }
 0x10c   :  { %v355_v40 = vadd.f32 %v1010_v39, %v1380_v6  ;;  %v312_v41 = vpop.f32.mrb[11].mxu0  ;;  %1036 = vmatmul.mubr.bf16.gmra.mrb[4].mxu1 %v379_v33  ;;  %v370_v43 = vmax.f32 %v354_v36, 0.0 }
 0x10d   :  { %v353_v42 = vadd.f32 %v1380_v6, %v312_v41  ;;  %1089 = vmatpush3.bf16.msra.mxu1 %v1127_v62  ;;  %v368_v45 = vmax.f32 %v352_v38, 0.0 }
 0x10e   :  { %v371_v44 = vmax.f32 %v355_v40, 0.0  ;;  %1082 = vmatprep.subr.bf16.mxu1 %v1352_v63 }
 0x10f   :  { %v369_v46 = vmax.f32 %v353_v42, 0.0 }
 0x110   :  { %v381_v47 = vpack.c.bf16 %v371_v44, %v370_v43 }
 0x111   :  { %v380_v48 = vpack.c.bf16 %v369_v46, %v368_v45  ;;  %v1013_v49 = vpop.f32.mrb[12].mxu0  ;;  %1090 = vmatpush3.bf16.msra.mxu1 %v1352_v63  ;;  %v1131_v63 = vld [vmem:[%s1503_s4 + $0x70] sm:$0xff]  }
 0x112   :  { %v358_v50 = vadd.f32 %v1013_v49, %v1380_v6  ;;  %v325_v51 = vpop.f32.mrb[13].mxu0  ;;  %1083 = vmatprep.subr.bf16.mxu1 %v1358_v0  ;;  %1059 = vmatprep.subr.bf16.mxu0 %v1131_v63 }
 0x113   :  { %v356_v52 = vadd.f32 %v1380_v6, %v325_v51  ;;  %v1014_v53 = vpop.f32.mrb[14].mxu0  ;;  %1039 = vmatprep.mubr.bf16.mxu1 %v380_v48  ;;  %1060 = vmatpush3.bf16.msra.mxu0 %v1131_v63 }
 0x114   :  { %v359_v54 = vadd.f32 %v1014_v53, %v1380_v6  ;;  %v328_v55 = vpop.f32.mrb[15].mxu0  ;;  %1040 = vmatmul.mubr.bf16.gmra.mrb[8].mxu1 %v381_v47  ;;  %v374_v57 = vmax.f32 %v358_v50, 0.0 }
 0x115   :  { %v357_v56 = vadd.f32 %v1380_v6, %v328_v55  ;;  %1091 = vmatpush3.bf16.msra.mxu1 %v1358_v0  ;;  %v372_v59 = vmax.f32 %v356_v52, 0.0  ;;  %v1132_v0 = vld [vmem:[%s1503_s4 + $0x78] sm:$0xff]   ;;  %s1162_s4 = smov [#allocation2]  }
 0x116   :  { %v375_v58 = vmax.f32 %v359_v54, 0.0  ;;  %1084 = vmatprep.subr.bf16.mxu1 %v1365_v1  ;;  %1061 = vmatprep.subr.bf16.mxu0 %v1132_v0  ;;  %s855_s15 = sshll.u32 %s1162_s4, 4  ;;  %s856_s15 = int_to_ptr.vmem [resolvable:$true] %s855_s15 }
 0x117   :  { %v373_v60 = vmax.f32 %v357_v56, 0.0  ;;  %1062 = vmatpush3.bf16.msra.mxu0 %v1132_v0  ;;  %s1137_s16 = scalar_lea.vmem %s856_s15, 16  ;;  %s1141_s17 = scalar_lea.vmem %s856_s15, 32 }
 0x118   :  { %v383_v61 = vpack.c.bf16 %v375_v58, %v374_v57  ;;  %p1138_p0 = scmp.ne.s32.totalorder %s856_s15, %s1137_s16  ;;  %p1142_p1 = scmp.lt.s32.totalorder %s856_s15, %s856_s15 }
 0x119   :  { %v382_v62 = vpack.c.bf16 %v373_v60, %v372_v59  ;;  %1092 = vmatpush3.bf16.msra.mxu1 %v1365_v1  ;;  %v402_v1 = vsub.s32 1, %v1371_v3  ;;  %p1143_p2 = scmp.lt.s32.totalorder %s1141_s17, %s1137_s16 }
 0x11a   :  { %1085 = vmatprep.subr.bf16.mxu1 %v1131_v63 }
 0x11b   :  { %1043 = vmatprep.mubr.bf16.mxu1 %v382_v62  ;;  %v403_v4 = vrot.slane %v1377_v5, %v402_v1  ;;  %v592_v62 = vsub.s32 2, %v1371_v3  ;;  %p1144_p3 = por %p1143_p2, %p1142_p1 }
 0x11c   :  { %1044 = vmatmul.mubr.bf16.gmra.mrb[12].mxu1 %v383_v61 }
 0x11d   :  { %1093 = vmatpush3.bf16.msra.mxu1 %v1131_v63  ;;  %v1414_v63 = vand.u32 127, %v340_v2  ;;  %v1418_v1 = vrot.slane %v1377_v5, %v592_v62  ;;  %v1161_v5 = vmov 0.0   ;;  %p1145_p4 = pnand %p1144_p3, %p1138_p0 }
 0x11e   :  { %1086 = vmatprep.subr.bf16.mxu1 %v1132_v0 }
 0x11f   :  { %vm758_vm4 = vcmp.eq.s32.totalorder %v1371_v3, %v1414_v63 }
 0x121   :  { %1094 = vmatpush3.bf16.msra.mxu1 %v1132_v0  ;;  %v741_v0 = vadd.s32 8, %v1371_v3 }
 0x123   :  { %vm759_vm5 = vcmp.eq.s32.totalorder %v741_v0, %v1414_v63 }
 0x1d7   :  { %v1033_v6 = vpop.f32.mrb[0].mxu1 }
 0x1d8   :  { %v495_v7 = vadd.f32 %v1033_v6, %v403_v4  ;;  %v486_v8 = vpop.f32.mrb[1].mxu1 }
 0x1d9   :  { %v487_v9 = vadd.f32 %v486_v8, %v403_v4  ;;  %v1034_v10 = vpop.f32.mrb[2].mxu1 }
 0x1da   :  { %v498_v11 = vadd.f32 %v1034_v10, %v403_v4  ;;  %v489_v12 = vpop.f32.mrb[3].mxu1  ;;  %v551_v14 = vmax.f32 %v495_v7, 0.0  ;;  %v743_v7 = vadd.s32 24, %v1371_v3  ;;  %v744_v10 = vadd.s32 32, %v1371_v3 }
 0x1db   :  { %v490_v13 = vadd.f32 %v489_v12, %v403_v4  ;;  %v549_v16 = vmax.f32 %v487_v9, 0.0 }
 0x1dc   :  { %v552_v15 = vmax.f32 %v498_v11, 0.0  ;;  %v913_v11 = vsel %vm758_vm4, 1.0, %v1161_v5  ;;  %vm761_vm7 = vcmp.eq.s32.totalorder %v743_v7, %v1414_v63  ;;  %vm762_vm8 = vcmp.eq.s32.totalorder %v744_v10, %v1414_v63 }
 0x1dd   :  { %v550_v17 = vmax.f32 %v490_v13, 0.0  ;;  %v914_v13 = vsel %vm759_vm5, 1.0, %v1161_v5  ;;  %v754_v7 = vadd.s32 112, %v1371_v3 }
 0x1de   :  { %v566_v18 = vpack.c.bf16 %v552_v15, %v551_v14 }
 0x1df   :  { %v565_v19 = vpack.c.bf16 %v550_v17, %v549_v16  ;;  %v1037_v20 = vpop.f32.mrb[4].mxu1  ;;  %v745_v16 = vadd.s32 40, %v1371_v3  ;;  %vm772_vm2 = vcmp.eq.s32.totalorder %v754_v7, %v1414_v63 }
 0x1e0   :  { %v511_v21 = vadd.f32 %v1037_v20, %v403_v4  ;;  %v502_v22 = vpop.f32.mrb[5].mxu1 }
 0x1e1   :  { %v503_v23 = vadd.f32 %v502_v22, %v403_v4  ;;  %v1038_v24 = vpop.f32.mrb[6].mxu1  ;;  %1063 = vmatprep.mubr.bf16.mxu0 %v565_v19  ;;  %v916_v22 = vsel %vm761_vm7, 1.0, %v1161_v5  ;;  %vm763_vm9 = vcmp.eq.s32.totalorder %v745_v16, %v1414_v63 }
 0x1e2   :  { %v514_v25 = vadd.f32 %v1038_v24, %v403_v4  ;;  %v505_v26 = vpop.f32.mrb[7].mxu1  ;;  %1064 = vmatmul.mubr.bf16.vlgmr.msra.gmra.mrb[16].mxu0 %v566_v18  ;;  %v555_v28 = vmax.f32 %v511_v21, 0.0  ;;  %v746_v18 = vadd.s32 48, %v1371_v3 }
 0x1e3   :  { %v506_v27 = vadd.f32 %v505_v26, %v403_v4  ;;  %v553_v30 = vmax.f32 %v503_v23, 0.0  ;;  %v747_v23 = vadd.s32 56, %v1371_v3 }
 0x1e4   :  { %v556_v29 = vmax.f32 %v514_v25, 0.0  ;;  %vm764_vm10 = vcmp.eq.s32.totalorder %v746_v18, %v1414_v63 }
 0x1e5   :  { %v554_v31 = vmax.f32 %v506_v27, 0.0  ;;  %vm765_vm11 = vcmp.eq.s32.totalorder %v747_v23, %v1414_v63 }
 0x1e6   :  { %v568_v32 = vpack.c.bf16 %v556_v29, %v555_v28  ;;  %v917_v28 = vsel %vm762_vm8, 1.0, %v1161_v5 }
 0x1e7   :  { %v567_v33 = vpack.c.bf16 %v554_v31, %v553_v30  ;;  %v1041_v34 = vpop.f32.mrb[8].mxu1 }
 0x1e8   :  { %v527_v35 = vadd.f32 %v1041_v34, %v403_v4  ;;  %v518_v36 = vpop.f32.mrb[9].mxu1 }
 0x1e9   :  { %v519_v37 = vadd.f32 %v518_v36, %v403_v4  ;;  %v1042_v38 = vpop.f32.mrb[10].mxu1  ;;  %1067 = vmatprep.mubr.bf16.mxu1 %v567_v33  ;;  %v748_v33 = vadd.s32 64, %v1371_v3  ;;  %v749_v36 = vadd.s32 72, %v1371_v3 }
 0x1ea   :  { %v530_v39 = vadd.f32 %v1042_v38, %v403_v4  ;;  %v521_v40 = vpop.f32.mrb[11].mxu1  ;;  %1068 = vmatmul.mubr.bf16.vlgmr.msra.gmra.mrb[16].mxu1 %v568_v32  ;;  %v559_v42 = vmax.f32 %v527_v35, 0.0  ;;  %v918_v35 = vsel %vm763_vm9, 1.0, %v1161_v5 }
 0x1eb   :  { %v522_v41 = vadd.f32 %v521_v40, %v403_v4  ;;  %v557_v44 = vmax.f32 %v519_v37, 0.0  ;;  %vm766_vm12 = vcmp.eq.s32.totalorder %v748_v33, %v1414_v63  ;;  %vm767_vm13 = vcmp.eq.s32.totalorder %v749_v36, %v1414_v63 }
 0x1ec   :  { %v560_v43 = vmax.f32 %v530_v39, 0.0 }
 0x1ed   :  { %v558_v45 = vmax.f32 %v522_v41, 0.0  ;;  %v919_v41 = vsel %vm764_vm10, 1.0, %v1161_v5 }
 0x1ee   :  { %v570_v46 = vpack.c.bf16 %v560_v43, %v559_v42  ;;  %v750_v42 = vadd.s32 80, %v1371_v3 }
 0x1ef   :  { %v569_v47 = vpack.c.bf16 %v558_v45, %v557_v44  ;;  %v1045_v48 = vpop.f32.mrb[12].mxu1 }
 0x1f0   :  { %v543_v49 = vadd.f32 %v1045_v48, %v403_v4  ;;  %v534_v50 = vpop.f32.mrb[13].mxu1  ;;  %vm768_vm14 = vcmp.eq.s32.totalorder %v750_v42, %v1414_v63 }
 0x1f1   :  { %v535_v51 = vadd.f32 %v534_v50, %v403_v4  ;;  %v1046_v52 = vpop.f32.mrb[14].mxu1  ;;  %1071 = vmatprep.mubr.bf16.mxu1 %v569_v47  ;;  %v751_v47 = vadd.s32 88, %v1371_v3 }
 0x1f2   :  { %v546_v53 = vadd.f32 %v1046_v52, %v403_v4  ;;  %v537_v54 = vpop.f32.mrb[15].mxu1  ;;  %1072 = vmatmul.mubr.bf16.gmra.mrb[20].mxu1 %v570_v46  ;;  %v563_v56 = vmax.f32 %v543_v49, 0.0  ;;  %v920_v46 = vsel %vm765_vm11, 1.0, %v1161_v5  ;;  %v921_v52 = vsel %vm766_vm12, 1.0, %v1161_v5 }
 0x1f3   :  { %v538_v55 = vadd.f32 %v537_v54, %v403_v4  ;;  %v561_v58 = vmax.f32 %v535_v51, 0.0  ;;  %v742_v4 = vadd.s32 16, %v1371_v3  ;;  %vm769_vm15 = vcmp.eq.s32.totalorder %v751_v47, %v1414_v63 }
 0x1f4   :  { %v564_v57 = vmax.f32 %v546_v53, 0.0  ;;  %v924_v10 = vsel %vm769_vm15, 1.0, %v1161_v5 }
 0x1f5   :  { %v562_v59 = vmax.f32 %v538_v55, 0.0  ;;  %vm760_vm6 = vcmp.eq.s32.totalorder %v742_v4, %v1414_v63 }
 0x1f6   :  { %v572_v60 = vpack.c.bf16 %v564_v57, %v563_v56  ;;  %v915_v17 = vsel %vm760_vm6, 1.0, %v1161_v5  ;;  %v752_v57 = vadd.s32 96, %v1371_v3 }
 0x1f7   :  { %v571_v61 = vpack.c.bf16 %v562_v59, %v561_v58  ;;  %v922_v59 = vsel %vm767_vm13, 1.0, %v1161_v5 }
 0x1f8   :  { %vm770_vm0 = vcmp.eq.s32.totalorder %v752_v57, %v1414_v63 }
 0x1f9   :  { %1075 = vmatprep.mubr.bf16.mxu1 %v571_v61  ;;  %v925_v16 = vsel %vm770_vm0, 1.0, %v1161_v5 }
 0x1fa   :  { %1076 = vmatmul.mubr.bf16.gmra.mrb[24].mxu1 %v572_v60  ;;  %v753_v60 = vadd.s32 104, %v1371_v3 }
 0x1fc   :  { %vm771_vm1 = vcmp.eq.s32.totalorder %v753_v60, %v1414_v63 }
 0x2b5   :  { %v1065_v6 = vpop.f32.mrb[16].mxu0 }
 0x2b6   :  { %v676_v8 = vpop.f32.mrb[17].mxu0  ;;  %v685_v14 = vadd.f32 %v1065_v6, %v1418_v1  ;;  %v923_v6 = vsel %vm768_vm14, 1.0, %v1161_v5 }
 0x2b7   :  { %v677_v2 = vadd.f32 %v676_v8, %v1418_v1  ;;  %v1066_v9 = vpop.f32.mrb[18].mxu0 }
 0x2b8   :  { %v679_v12 = vpop.f32.mrb[19].mxu0  ;;  %v688_v20 = vadd.f32 %v1066_v9, %v1418_v1  ;;  %v808_v24 = vmul.f32 %v915_v17, %v685_v14 }
 0x2b9   :  { %v680_v15 = vadd.f32 %v679_v12, %v1418_v1  ;;  %v806_v19 = vmul.f32 %v913_v11, %v677_v2  ;;  %v755_v11 = vadd.s32 120, %v1371_v3  ;;  %v926_v3 = vsel %vm771_vm1, 1.0, %v1161_v5 }
 0x2ba   :  { %v809_v29 = vmul.f32 %v916_v22, %v688_v20 }
 0x2bb   :  { %v807_v21 = vmul.f32 %v914_v13, %v680_v15  ;;  %vm773_vm3 = vcmp.eq.s32.totalorder %v755_v11, %v1414_v63 }
 0x2bd   :  { %v822_v25 = vadd.f32 %v807_v21, %v806_v19  ;;  %v1069_v26 = vpop.f32.mrb[16].mxu1 }
 0x2be   :  { %v692_v27 = vpop.f32.mrb[17].mxu1  ;;  %v701_v37 = vadd.f32 %v1069_v26, %v1418_v1  ;;  %v927_v26 = vsel %vm772_vm2, 1.0, %v1161_v5 }
 0x2bf   :  { %v823_v30 = vadd.f32 %v822_v25, %v808_v24  ;;  %v693_v31 = vadd.f32 %v692_v27, %v1418_v1  ;;  %v1070_v32 = vpop.f32.mrb[18].mxu1 }
 0x2c0   :  { %v695_v34 = vpop.f32.mrb[19].mxu1  ;;  %v704_v44 = vadd.f32 %v1070_v32, %v1418_v1  ;;  %v812_v48 = vmul.f32 %v919_v41, %v701_v37 }
 0x2c1   :  { %v810_v38 = vmul.f32 %v917_v28, %v693_v31  ;;  %v824_v39 = vadd.f32 %v823_v30, %v809_v29  ;;  %v696_v40 = vadd.f32 %v695_v34, %v1418_v1  ;;  %v928_v30 = vsel %vm773_vm3, 1.0, %v1161_v5 }
 0x2c2   :  { %v813_v53 = vmul.f32 %v920_v46, %v704_v44 }
 0x2c3   :  { %v825_v43 = vadd.f32 %v824_v39, %v810_v38  ;;  %v811_v45 = vmul.f32 %v918_v35, %v696_v40 }
 0x2c5   :  { %v826_v49 = vadd.f32 %v825_v43, %v811_v45  ;;  %v1073_v50 = vpop.f32.mrb[20].mxu1 }
 0x2c6   :  { %v708_v51 = vpop.f32.mrb[21].mxu1  ;;  %v717_v61 = vadd.f32 %v1073_v50, %v1418_v1 }
 0x2c7   :  { %v827_v54 = vadd.f32 %v826_v49, %v812_v48  ;;  %v709_v55 = vadd.f32 %v708_v51, %v1418_v1  ;;  %v1074_v56 = vpop.f32.mrb[22].mxu1 }
 0x2c8   :  { %v711_v58 = vpop.f32.mrb[23].mxu1  ;;  %v720_v2 = vadd.f32 %v1074_v56, %v1418_v1  ;;  %v816_v12 = vmul.f32 %v923_v6, %v717_v61 }
 0x2c9   :  { %v814_v62 = vmul.f32 %v921_v52, %v709_v55  ;;  %v828_v0 = vadd.f32 %v827_v54, %v813_v53  ;;  %v712_v4 = vadd.f32 %v711_v58, %v1418_v1 }
 0x2ca   :  { %v817_v17 = vmul.f32 %v924_v10, %v720_v2 }
 0x2cb   :  { %v829_v8 = vadd.f32 %v828_v0, %v814_v62  ;;  %v815_v9 = vmul.f32 %v922_v59, %v712_v4 }
 0x2cd   :  { %v830_v13 = vadd.f32 %v829_v8, %v815_v9  ;;  %v1077_v14 = vpop.f32.mrb[24].mxu1 }
 0x2ce   :  { %v724_v15 = vpop.f32.mrb[25].mxu1  ;;  %v733_v22 = vadd.f32 %v1077_v14, %v1418_v1 }
 0x2cf   :  { %v831_v18 = vadd.f32 %v830_v13, %v816_v12  ;;  %v725_v19 = vadd.f32 %v724_v15, %v1418_v1  ;;  %v1078_v20 = vpop.f32.mrb[26].mxu1 }
 0x2d0   :  { %v727_v21 = vpop.f32.mrb[27].mxu1  ;;  %v736_v28 = vadd.f32 %v1078_v20, %v1418_v1  ;;  %v820_v31 = vmul.f32 %v927_v26, %v733_v22 }
 0x2d1   :  { %v818_v23 = vmul.f32 %v925_v16, %v725_v19  ;;  %v832_v24 = vadd.f32 %v831_v18, %v817_v17  ;;  %v728_v25 = vadd.f32 %v727_v21, %v1418_v1 }
 0x2d2   :  { %v821_v63 = vmul.f32 %v928_v30, %v736_v28 }
 0x2d3   :  { %v833_v27 = vadd.f32 %v832_v24, %v818_v23  ;;  %v819_v29 = vmul.f32 %v926_v3, %v728_v25 }
 0x2d5   :  { %v834_v32 = vadd.f32 %v833_v27, %v819_v29 }
 0x2d7   :  { %v835_v33 = vadd.f32 %v834_v32, %v820_v31 }
 0x2d9   :  { %v836_v34 = vadd.f32 %v835_v33, %v821_v63 }
 0x2db   :  { %v837_v35 = vrot.slane %v836_v34, 4 }
 0x2dd   :  { %v838_v36 = vadd.f32 %v837_v35, %v836_v34 }
 0x2df   :  { %v839_v37 = vrot.slane %v838_v36, 2 }
 0x2e1   :  { %v840_v38 = vadd.f32 %v839_v37, %v838_v36 }
 0x2e3   :  { %v841_v39 = vrot.slane %v840_v38, 1 }
 0x2e5   :  { %v842_v40 = vadd.f32 %v841_v39, %v840_v38 }
 0x2e7   :  { %v843_v41 = vsub.f32 0.0, %v842_v40 }
 0x2e9   :  { %v844_v42 = vmul.f32 1.442695, %v843_v41 }
 0x2eb   :  { %1133 = vpow2.f32 %v844_v42 }
 0x2f5   :  { %v1134_v43 = vpop.eup %1133 }
 0x2f6   :  { %v846_v44 = vadd.f32 1.0, %v1134_v43 }
 0x2f8   :  { %1135 = vrcp.f32 %v846_v44 }
 0x302   :  { %v1136_v1 = vpop.eup %1135 }
 0x303   :  { %848 = vst [vmem:[#allocation2] sm:$0x1] %v1136_v1 }
 0x304   :  { %1148 = shalt.err (!%p1145_p4)
}
 0x305   :  { %s1149_s19 = scalar_lea.hbm %s1505_s6, 16 }
 0x306   :  { %p1150_p5 = scmp.ne.s32.totalorder %s1505_s6, %s1149_s19  ;;  %p1153_p6 = scmp.lt.u32.totalorder %s1149_s19, %s1505_s6 }
 0x308   :  { %p1155_p7 = pnand %p1153_p6, %p1150_p5 }
 0x30a   :  { %1158 = shalt.err (!%p1155_p7)
}
 0x30b   :  { %858 = dma.vmem_to_hbm [thread:$0]  %s856_s15, 16, %s1505_s6, [#allocation3]  }
 0x30c   :  { %1159 = dma.done.wait [#allocation3], 16  }
 0x30d   :  { %1160 = vsyncadd [#allocation3], 4294967280 }
 0x30e   :  { %862 = vsyncpa [#allocation3], 1 }

</bundles_post_ra>
